<compile_context>
chip_gen: v6e
topology: v6e:2x2x1
jax: 0.10.0
libtpu: 0.0.40
codegen_flags: <defaults>
</compile_context>

<pallas_src>
import numpy as np
import jax
import jax.numpy as jnp
from jax.experimental import pallas as pl
from jax.experimental.pallas import tpu as pltpu


def transform_net_kernel(x_ref, w1_ref, w2_ref, w3_ref,
                         wf1_ref, wf2_ref, wf3_ref, t_ref, o_ref):
    """One grid step == TILE_B batch elements (TILE_B*KP activation rows)."""
    m = x_ref.shape[0]            # TILE_B * KP rows
    tb, kk = o_ref.shape          # TILE_B, K*K
    kp = m // tb

    c1 = w1_ref.shape[1]
    c2 = w2_ref.shape[1]
    c3 = w3_ref.shape[1]
    c4 = wf1_ref.shape[1]
    c5 = wf2_ref.shape[1]
    o1 = 0
    o2 = o1 + c1
    o3 = o2 + c2
    o4 = o3 + c3
    o5 = o4 + c4
    o6 = o5 + c5

    def lin_bn_relu(h, w_ref, off, c, out_dtype=jnp.bfloat16):
        # (rows, cin) @ (cin, c) on the MXU with f32 accumulation, add the
        # folded BN/bias shift, ReLU, cast for the next MXU pass.
        y = jnp.dot(h, w_ref[...], preferred_element_type=jnp.float32)
        y = jnp.maximum(y + t_ref[:, off:off + c], 0.0)
        return y.astype(out_dtype)

    x = x_ref[...]                                       # (TB*KP, DIM) bf16
    h = lin_bn_relu(x, w1_ref, o1, c1)                   # cnn1 -> (TB*KP, 64)
    h = lin_bn_relu(h, w2_ref, o2, c2)                   # cnn2 -> (TB*KP, 128)
    h = lin_bn_relu(h, w3_ref, o3, c3,                   # cnn3 -> (TB*KP, H)
                    out_dtype=jnp.float32)
    # MaxPool2d((KP, 1)): per-sample max over the KP keypoint rows.
    g = jnp.max(h.reshape(tb, kp, c3), axis=1).astype(jnp.bfloat16)  # (TB, H)
    g = lin_bn_relu(g, wf1_ref, o4, c4)                  # fc1 -> (TB, H//2)
    g = lin_bn_relu(g, wf2_ref, o5, c5)                  # fc2 -> (TB, H//4)
    out = jnp.dot(g, wf3_ref[...], preferred_element_type=jnp.float32)
    o_ref[...] = out + t_ref[:, o6:o6 + kk]              # fc3 bias + identity


def prepare_kernel_params(p):
    """Fold BN scale into the weights (bf16) and pack the shifts into one f32 row."""
    def fold(w, s):
        return (w * s).astype(jnp.bfloat16)
    weights = (fold(p["w1"], p["s1"]), fold(p["w2"], p["s2"]),
               fold(p["w3"], p["s3"]), fold(p["wf1"], p["s4"]),
               fold(p["wf2"], p["s5"]), p["wf3"].astype(jnp.bfloat16))
    t_all = jnp.concatenate(
        [p["t1"], p["t2"], p["t3"], p["t4"], p["t5"], p["tf3"]],
        axis=1).astype(jnp.float32)
    return weights + (t_all,)


def transform_net_forward(x, kparams, dim=3, tile_b=16):
    """x: (B, KP, DIM) float.  Returns (B, dim, dim) float32."""
    B, KP, DIM = x.shape
    w1, w2, w3, wf1, wf2, wf3, t_all = kparams
    kk = wf3.shape[1]

    # Sublane-dense output slab and (rows, DIM) input block both need 8-row
    # alignment; tile_b=16 also gives 256 MXU rows at KP=16.
    assert tile_b % 8 == 0 and (tile_b * KP) % 8 == 0

    n_tiles = pl.cdiv(B, tile_b)
    b_pad = n_tiles * tile_b
    if b_pad != B:
        x = jnp.concatenate(
            [x, jnp.zeros((b_pad - B, KP, DIM), x.dtype)], axis=0)
    x_flat = x.reshape(b_pad * KP, DIM).astype(jnp.bfloat16)

    rows = tile_b * KP

    def weight_spec(a):
        return pl.BlockSpec(a.shape, lambda i: (0, 0))

    in_specs = [pl.BlockSpec((rows, DIM), lambda i: (i, 0)),
                weight_spec(w1), weight_spec(w2), weight_spec(w3),
                weight_spec(wf1), weight_spec(wf2), weight_spec(wf3),
                weight_spec(t_all)]

    out = pl.pallas_call(
        transform_net_kernel,
        out_shape=jax.ShapeDtypeStruct((b_pad, kk), jnp.float32),
        grid=(n_tiles,),
        in_specs=in_specs,
        out_specs=pl.BlockSpec((tile_b, kk), lambda i: (i, 0)),
        compiler_params=pltpu.CompilerParams(
            dimension_semantics=("parallel",)),
    )(x_flat, w1, w2, w3, wf1, wf2, wf3, t_all)
    return out[:B].reshape(B, dim, dim)


def init_params(key, dim=3, hidden_dim=32):
    """Deterministic synthetic parameters (conv/linear weights + folded eval-mode BN)."""
    eps = 1e-5
    keys = iter(jax.random.split(key, 32))

    def lin(cin, cout):
        w = jax.random.normal(next(keys), (cin, cout), jnp.float32) / np.sqrt(cin)
        b = 0.01 * jax.random.normal(next(keys), (cout,), jnp.float32)
        return w, b

    def bn(c):
        gamma = 1.0 + 0.1 * jax.random.normal(next(keys), (c,), jnp.float32)
        beta = 0.1 * jax.random.normal(next(keys), (c,), jnp.float32)
        mean = 0.1 * jax.random.normal(next(keys), (c,), jnp.float32)
        var = 1.0 + 0.1 * jax.random.uniform(next(keys), (c,), jnp.float32)
        return gamma, beta, mean, var

    def fold(bias, gamma, beta, mean, var):
        s = gamma / jnp.sqrt(var + eps)
        t = s * (bias - mean) + beta
        return s.reshape(1, -1), t.reshape(1, -1)

    p = {}
    # cnn1: Conv2d(1, 64, (1, dim)) -> matmul (dim, 64); BatchNorm2d(64)
    w1, b1 = lin(dim, 64)
    p["w1"] = w1
    p["s1"], p["t1"] = fold(b1, *bn(64))
    # cnn2: Conv2d(64, 128, (1,1)); BatchNorm2d(128)
    w2, b2 = lin(64, 128)
    p["w2"] = w2
    p["s2"], p["t2"] = fold(b2, *bn(128))
    # cnn3: Conv2d(128, hidden_dim, (1,1)); BatchNorm2d(hidden_dim)
    w3, b3 = lin(128, hidden_dim)
    p["w3"] = w3
    p["s3"], p["t3"] = fold(b3, *bn(hidden_dim))
    # fc1: Linear(hidden, hidden//2); BatchNorm1d(hidden//2)
    wf1, bf1 = lin(hidden_dim, hidden_dim // 2)
    p["wf1"] = wf1
    p["s4"], p["t4"] = fold(bf1, *bn(hidden_dim // 2))
    # fc2: Linear(hidden//2, hidden//4); BatchNorm1d(hidden//4)
    wf2, bf2 = lin(hidden_dim // 2, hidden_dim // 4)
    p["wf2"] = wf2
    p["s5"], p["t5"] = fold(bf2, *bn(hidden_dim // 4))
    # fc3: Linear(hidden//4, dim*dim); bias + flattened identity (no BN)
    wf3, bf3 = lin(hidden_dim // 4, dim * dim)
    p["wf3"] = wf3
    p["tf3"] = (bf3 + jnp.eye(dim, dtype=jnp.float32).flatten()).reshape(1, -1)
    return p


def reference_forward_f32(x, p, dim=3):
    """Plain-JAX f32 reference of the original (unfused) math."""
    B, KP, DIM = x.shape
    h = x.reshape(B * KP, DIM)
    h = jnp.maximum((h @ p["w1"]) * p["s1"] + p["t1"], 0.0)
    h = jnp.maximum((h @ p["w2"]) * p["s2"] + p["t2"], 0.0)
    h = jnp.maximum((h @ p["w3"]) * p["s3"] + p["t3"], 0.0)
    g = jnp.max(h.reshape(B, KP, -1), axis=1)
    g = jnp.maximum((g @ p["wf1"]) * p["s4"] + p["t4"], 0.0)
    g = jnp.maximum((g @ p["wf2"]) * p["s5"] + p["t5"], 0.0)
    out = g @ p["wf3"] + p["tf3"]
    return out.reshape(B, dim, dim)


def reference_forward_bf16(x, kparams, dim=3):
    """Plain-JAX mirror of the kernel's bf16/f32 math, for a tight check."""
    w1, w2, w3, wf1, wf2, wf3, t_all = kparams
    B, KP, DIM = x.shape
    sizes = [w1.shape[1], w2.shape[1], w3.shape[1],
             wf1.shape[1], wf2.shape[1], wf3.shape[1]]
    offs = np.concatenate([[0], np.cumsum(sizes)]).astype(int)

    def t(i):
        return t_all[:, offs[i]:offs[i + 1]]

    def layer(h, w, i, out_dtype=jnp.bfloat16):
        y = jnp.dot(h, w, preferred_element_type=jnp.float32)
        return jnp.maximum(y + t(i), 0.0).astype(out_dtype)

    h = x.reshape(B * KP, DIM).astype(jnp.bfloat16)
    h = layer(h, w1, 0)
    h = layer(h, w2, 1)
    h = layer(h, w3, 2, out_dtype=jnp.float32)
    g = jnp.max(h.reshape(B, KP, -1), axis=1).astype(jnp.bfloat16)
    g = layer(g, wf1, 3)
    g = layer(g, wf2, 4)
    out = jnp.dot(g, wf3, preferred_element_type=jnp.float32) + t(5)
    return out.reshape(B, dim, dim)


if __name__ == "__main__":
    # Small shapes: batch=2, kp=16 keypoints, dim=3, hidden_dim=32
    # (cnn1/cnn2 output channels 64/128 are fixed by the module definition).
    B, KP, DIM, HIDDEN = 2, 16, 3, 32

    key = jax.random.PRNGKey(0)
    k_x, k_p = jax.random.split(key)
    x = jax.random.normal(k_x, (B, KP, DIM), jnp.float32)
    params = init_params(k_p, dim=DIM, hidden_dim=HIDDEN)
    kparams = prepare_kernel_params(params)

    out = transform_net_forward(x, kparams, dim=DIM, tile_b=16)
    out = jax.block_until_ready(out)

    ref_bf16 = jax.block_until_ready(reference_forward_bf16(x, kparams, dim=DIM))
    ref_f32 = jax.block_until_ready(reference_forward_f32(x, params, dim=DIM))

    out_np = np.asarray(out)
    assert out.shape == (B, DIM, DIM), out.shape
    assert np.all(np.isfinite(out_np))
    # Tight check vs. a plain-JAX mirror of the kernel's bf16/f32 math.
    assert np.allclose(out_np, np.asarray(ref_bf16), rtol=2e-2, atol=2e-2), (
        np.max(np.abs(out_np - np.asarray(ref_bf16))))
    # Looser check vs. the original unfused f32 math (bf16 quantization only).
    assert np.allclose(out_np, np.asarray(ref_f32), rtol=1e-1, atol=1e-1), (
        np.max(np.abs(out_np - np.asarray(ref_f32))))

    print("KERNEL_OK")
</pallas_src>

<mosaic_0001>
module attributes {stable_mosaic.version = 11 : i64} {
  func.func @transform_net_kernel(%arg0: i32, %arg1: memref<256x3xbf16, #tpu.memory_space<vmem>>, %arg2: memref<3x64xbf16, #tpu.memory_space<vmem>>, %arg3: memref<64x128xbf16, #tpu.memory_space<vmem>>, %arg4: memref<128x32xbf16, #tpu.memory_space<vmem>>, %arg5: memref<32x16xbf16, #tpu.memory_space<vmem>>, %arg6: memref<16x8xbf16, #tpu.memory_space<vmem>>, %arg7: memref<8x9xbf16, #tpu.memory_space<vmem>>, %arg8: memref<1x257xf32, #tpu.memory_space<vmem>>, %arg9: memref<16x9xf32, #tpu.memory_space<vmem>>) attributes {dimension_semantics = [#tpu.dimension_semantics<parallel>], iteration_bounds = array<i64: 1>, scalar_prefetch = 0 : i64, scratch_operands = 0 : i64, tpu.core_type = #tpu.core_type<tc>, window_params = [{transform_indices = @transform_0, window_bounds = array<i64: 256, 3>}, {pipeline_mode = #tpu.pipeline_mode<synchronous>, transform_indices = @transform_1, window_bounds = array<i64: 3, 64>}, {pipeline_mode = #tpu.pipeline_mode<synchronous>, transform_indices = @transform_2, window_bounds = array<i64: 64, 128>}, {pipeline_mode = #tpu.pipeline_mode<synchronous>, transform_indices = @transform_3, window_bounds = array<i64: 128, 32>}, {pipeline_mode = #tpu.pipeline_mode<synchronous>, transform_indices = @transform_4, window_bounds = array<i64: 32, 16>}, {pipeline_mode = #tpu.pipeline_mode<synchronous>, transform_indices = @transform_5, window_bounds = array<i64: 16, 8>}, {pipeline_mode = #tpu.pipeline_mode<synchronous>, transform_indices = @transform_6, window_bounds = array<i64: 8, 9>}, {pipeline_mode = #tpu.pipeline_mode<synchronous>, transform_indices = @transform_7, window_bounds = array<i64: 1, 257>}, {transform_indices = @transform_8, window_bounds = array<i64: 16, 9>}]} {
    %c0 = arith.constant 0 : index
    %c0_0 = arith.constant 0 : index
    %0 = vector.load %arg1[%c0, %c0_0] : memref<256x3xbf16, #tpu.memory_space<vmem>>, vector<256x3xbf16>
    %c0_1 = arith.constant 0 : index
    %c0_2 = arith.constant 0 : index
    %1 = vector.load %arg2[%c0_1, %c0_2] : memref<3x64xbf16, #tpu.memory_space<vmem>>, vector<3x64xbf16>
    %cst = arith.constant dense<0.000000e+00> : vector<256x64xf32>
    %2 = tpu.matmul %0, %1, %cst {dimension_numbers = #tpu.dot_dimension_numbers<[1], [0], [0], [1], [0, 0, 1, 1], [], []>} : vector<256x3xbf16>, vector<3x64xbf16>, vector<256x64xf32> -> vector<256x64xf32>
    %c0_3 = arith.constant 0 : index
    %c0_4 = arith.constant 0 : index
    %3 = vector.load %arg8[%c0_3, %c0_4] : memref<1x257xf32, #tpu.memory_space<vmem>>, vector<1x64xf32>
    %4 = vector.broadcast %3 : vector<1x64xf32> to vector<256x64xf32>
    %5 = arith.addf %2, %4 : vector<256x64xf32>
    %cst_5 = arith.constant 0.000000e+00 : f32
    %6 = vector.broadcast %cst_5 : f32 to vector<256x64xf32>
    %7 = arith.maximumf %5, %6 : vector<256x64xf32>
    %8 = arith.truncf %7 : vector<256x64xf32> to vector<256x64xbf16>
    %c0_6 = arith.constant 0 : index
    %c0_7 = arith.constant 0 : index
    %9 = vector.load %arg3[%c0_6, %c0_7] : memref<64x128xbf16, #tpu.memory_space<vmem>>, vector<64x128xbf16>
    %cst_8 = arith.constant dense<0.000000e+00> : vector<256x128xf32>
    %10 = tpu.matmul %8, %9, %cst_8 {dimension_numbers = #tpu.dot_dimension_numbers<[1], [0], [0], [1], [0, 0, 1, 1], [], []>} : vector<256x64xbf16>, vector<64x128xbf16>, vector<256x128xf32> -> vector<256x128xf32>
    %c0_9 = arith.constant 0 : index
    %c64 = arith.constant 64 : index
    %11 = vector.load %arg8[%c0_9, %c64] : memref<1x257xf32, #tpu.memory_space<vmem>>, vector<1x128xf32>
    %12 = vector.broadcast %11 : vector<1x128xf32> to vector<256x128xf32>
    %13 = arith.addf %10, %12 : vector<256x128xf32>
    %cst_10 = arith.constant 0.000000e+00 : f32
    %14 = vector.broadcast %cst_10 : f32 to vector<256x128xf32>
    %15 = arith.maximumf %13, %14 : vector<256x128xf32>
    %16 = arith.truncf %15 : vector<256x128xf32> to vector<256x128xbf16>
    %c0_11 = arith.constant 0 : index
    %c0_12 = arith.constant 0 : index
    %17 = vector.load %arg4[%c0_11, %c0_12] : memref<128x32xbf16, #tpu.memory_space<vmem>>, vector<128x32xbf16>
    %cst_13 = arith.constant dense<0.000000e+00> : vector<256x32xf32>
    %18 = tpu.matmul %16, %17, %cst_13 {dimension_numbers = #tpu.dot_dimension_numbers<[1], [0], [0], [1], [0, 0, 1, 1], [], []>} : vector<256x128xbf16>, vector<128x32xbf16>, vector<256x32xf32> -> vector<256x32xf32>
    %c0_14 = arith.constant 0 : index
    %c192 = arith.constant 192 : index
    %19 = vector.load %arg8[%c0_14, %c192] : memref<1x257xf32, #tpu.memory_space<vmem>>, vector<1x32xf32>
    %20 = vector.broadcast %19 : vector<1x32xf32> to vector<256x32xf32>
    %21 = arith.addf %18, %20 : vector<256x32xf32>
    %cst_15 = arith.constant 0.000000e+00 : f32
    %22 = vector.broadcast %cst_15 : f32 to vector<256x32xf32>
    %23 = arith.maximumf %21, %22 : vector<256x32xf32>
    %24 = vector.shape_cast %23 : vector<256x32xf32> to vector<16x16x32xf32>
    %cst_16 = arith.constant dense<0xFF800000> : vector<16x32xf32>
    %25 = vector.multi_reduction <maximumf>, %24, %cst_16 [1] : vector<16x16x32xf32> to vector<16x32xf32>
    %26 = arith.truncf %25 : vector<16x32xf32> to vector<16x32xbf16>
    %c0_17 = arith.constant 0 : index
    %c0_18 = arith.constant 0 : index
    %27 = vector.load %arg5[%c0_17, %c0_18] : memref<32x16xbf16, #tpu.memory_space<vmem>>, vector<32x16xbf16>
    %cst_19 = arith.constant dense<0.000000e+00> : vector<16x16xf32>
    %28 = tpu.matmul %26, %27, %cst_19 {dimension_numbers = #tpu.dot_dimension_numbers<[1], [0], [0], [1], [0, 0, 1, 1], [], []>} : vector<16x32xbf16>, vector<32x16xbf16>, vector<16x16xf32> -> vector<16x16xf32>
    %c0_20 = arith.constant 0 : index
    %c224 = arith.constant 224 : index
    %29 = vector.load %arg8[%c0_20, %c224] : memref<1x257xf32, #tpu.memory_space<vmem>>, vector<1x16xf32>
    %30 = vector.broadcast %29 : vector<1x16xf32> to vector<16x16xf32>
    %31 = arith.addf %28, %30 : vector<16x16xf32>
    %cst_21 = arith.constant 0.000000e+00 : f32
    %32 = vector.broadcast %cst_21 : f32 to vector<16x16xf32>
    %33 = arith.maximumf %31, %32 : vector<16x16xf32>
    %34 = arith.truncf %33 : vector<16x16xf32> to vector<16x16xbf16>
    %c0_22 = arith.constant 0 : index
    %c0_23 = arith.constant 0 : index
    %35 = vector.load %arg6[%c0_22, %c0_23] : memref<16x8xbf16, #tpu.memory_space<vmem>>, vector<16x8xbf16>
    %cst_24 = arith.constant dense<0.000000e+00> : vector<16x8xf32>
    %36 = tpu.matmul %34, %35, %cst_24 {dimension_numbers = #tpu.dot_dimension_numbers<[1], [0], [0], [1], [0, 0, 1, 1], [], []>} : vector<16x16xbf16>, vector<16x8xbf16>, vector<16x8xf32> -> vector<16x8xf32>
    %c0_25 = arith.constant 0 : index
    %c240 = arith.constant 240 : index
    %37 = vector.load %arg8[%c0_25, %c240] : memref<1x257xf32, #tpu.memory_space<vmem>>, vector<1x8xf32>
    %38 = vector.broadcast %37 : vector<1x8xf32> to vector<16x8xf32>
    %39 = arith.addf %36, %38 : vector<16x8xf32>
    %cst_26 = arith.constant 0.000000e+00 : f32
    %40 = vector.broadcast %cst_26 : f32 to vector<16x8xf32>
    %41 = arith.maximumf %39, %40 : vector<16x8xf32>
    %42 = arith.truncf %41 : vector<16x8xf32> to vector<16x8xbf16>
    %c0_27 = arith.constant 0 : index
    %c0_28 = arith.constant 0 : index
    %43 = vector.load %arg7[%c0_27, %c0_28] : memref<8x9xbf16, #tpu.memory_space<vmem>>, vector<8x9xbf16>
    %cst_29 = arith.constant dense<0.000000e+00> : vector<16x9xf32>
    %44 = tpu.matmul %42, %43, %cst_29 {dimension_numbers = #tpu.dot_dimension_numbers<[1], [0], [0], [1], [0, 0, 1, 1], [], []>} : vector<16x8xbf16>, vector<8x9xbf16>, vector<16x9xf32> -> vector<16x9xf32>
    %c0_30 = arith.constant 0 : index
    %c248 = arith.constant 248 : index
    %45 = vector.load %arg8[%c0_30, %c248] : memref<1x257xf32, #tpu.memory_space<vmem>>, vector<1x9xf32>
    %46 = vector.broadcast %45 : vector<1x9xf32> to vector<16x9xf32>
    %47 = arith.addf %44, %46 : vector<16x9xf32>
    %c0_31 = arith.constant 0 : index
    %c0_32 = arith.constant 0 : index
    %48 = vector.load %arg9[%c0_31, %c0_32] : memref<16x9xf32, #tpu.memory_space<vmem>>, vector<16x9xf32>
    tpu.vector_store %arg9[%c0_31, %c0_32], %47 {strides = array<i32>} : memref<16x9xf32, #tpu.memory_space<vmem>>, vector<16x9xf32>,
    return
  }
  func.func @transform_0(%arg0: i32) -> (i32, i32) {
    %c0_i32 = arith.constant 0 : i32
    %c0_i32_0 = arith.constant 0 : i32
    return %arg0, %c0_i32 : i32, i32
  }
  func.func @transform_1(%arg0: i32) -> (i32, i32) {
    %c0_i32 = arith.constant 0 : i32
    %c0_i32_0 = arith.constant 0 : i32
    %c0_i32_1 = arith.constant 0 : i32
    return %c0_i32, %c0_i32_0 : i32, i32
  }
  func.func @transform_2(%arg0: i32) -> (i32, i32) {
    %c0_i32 = arith.constant 0 : i32
    %c0_i32_0 = arith.constant 0 : i32
    %c0_i32_1 = arith.constant 0 : i32
    return %c0_i32, %c0_i32_0 : i32, i32
  }
  func.func @transform_3(%arg0: i32) -> (i32, i32) {
    %c0_i32 = arith.constant 0 : i32
    %c0_i32_0 = arith.constant 0 : i32
    %c0_i32_1 = arith.constant 0 : i32
    return %c0_i32, %c0_i32_0 : i32, i32
  }
  func.func @transform_4(%arg0: i32) -> (i32, i32) {
    %c0_i32 = arith.constant 0 : i32
    %c0_i32_0 = arith.constant 0 : i32
    %c0_i32_1 = arith.constant 0 : i32
    return %c0_i32, %c0_i32_0 : i32, i32
  }
  func.func @transform_5(%arg0: i32) -> (i32, i32) {
    %c0_i32 = arith.constant 0 : i32
    %c0_i32_0 = arith.constant 0 : i32
    %c0_i32_1 = arith.constant 0 : i32
    return %c0_i32, %c0_i32_0 : i32, i32
  }
  func.func @transform_6(%arg0: i32) -> (i32, i32) {
    %c0_i32 = arith.constant 0 : i32
    %c0_i32_0 = arith.constant 0 : i32
    %c0_i32_1 = arith.constant 0 : i32
    return %c0_i32, %c0_i32_0 : i32, i32
  }
  func.func @transform_7(%arg0: i32) -> (i32, i32) {
    %c0_i32 = arith.constant 0 : i32
    %c0_i32_0 = arith.constant 0 : i32
    %c0_i32_1 = arith.constant 0 : i32
    return %c0_i32, %c0_i32_0 : i32, i32
  }
  func.func @transform_8(%arg0: i32) -> (i32, i32) {
    %c0_i32 = arith.constant 0 : i32
    %c0_i32_0 = arith.constant 0 : i32
    return %arg0, %c0_i32 : i32, i32
  }
}

</mosaic_0001>

<bundles_post_ra>
// kernel: tpu_custom_call.1
= control target key start
LH: loop header
LB: loop body
LE: loop exit
PB: predicated region body
PF: predicated region fallthrough
CT: control target
= control target key end

     0   :  { %vm200_vm0 = vcmask 1040384   ;;  %vm201_vm1 = vcmask 1041408   ;;  %v1755_v2 = vmov 65535   ;;  %vm151_vm2 = vcmask 23552   ;;  %s2166_s0 = inlined_call_operand.vmem [shape: bf16[256,3], index: 0, kind: input, shape index: {}]   ;;  %s2167_s1 = inlined_call_operand.vmem [shape: bf16[3,64], index: 1, kind: input, shape index: {}]   ;;  %s2168_s2 = inlined_call_operand.vmem [shape: bf16[64,128], index: 2, kind: input, shape index: {}]   ;;  %s2169_s3 = inlined_call_operand.vmem [shape: bf16[128,32], index: 3, kind: input, shape index: {}]   ;;  %s2170_s4 = inlined_call_operand.vmem [shape: bf16[32,16], index: 4, kind: input, shape index: {}]   ;;  %s2171_s5 = inlined_call_operand.vmem [shape: bf16[16,8], index: 5, kind: input, shape index: {}]   ;;  %s2172_s6 = inlined_call_operand.vmem [shape: bf16[8,9], index: 6, kind: input, shape index: {}]   ;;  %s2173_s7 = inlined_call_operand.vmem [shape: f32[1,257], index: 7, kind: input, shape index: {}]   ;;  %s2174_s8 = inlined_call_operand.hbm [shape: f32[16,9], index: 8, kind: output, shape index: {}]  }
   0x1   :  { %v63_v0 = vld [vmem:[%s2167_s1] sm:$0x3]  ;;  %v202_v3 = vsel %vm200_vm0, 4294967295, %v1755_v2  ;;  %v1703_v6 = vld [vmem:[%s2166_s0 + $0x8] sm:$0xff]   ;;  %v1704_v7 = vld [vmem:[%s2166_s0 + $0x10] sm:$0xff]  }
   0x2   :  { %v1702_v1 = vld [vmem:[%s2166_s0] sm:$0xff]   ;;  %v203_v4 = vsel %vm201_vm1, %v202_v3, 0  ;;  %v1705_v8 = vld [vmem:[%s2166_s0 + $0x18] sm:$0xff]   ;;  %v1715_v11 = vld [vmem:[%s2166_s0 + $0x68] sm:$0xff]  }
   0x3   :  { %1551 = vmatprep.mubr.msk.bf16.mxu0 %vm151_vm2, %v1702_v1  ;;  %v205_v5 = vand.u32 %v203_v4, %v63_v0  ;;  %v1706_v9 = vld [vmem:[%s2166_s0 + $0x20] sm:$0xff]   ;;  %v1716_v12 = vld [vmem:[%s2166_s0 + $0x70] sm:$0xff]   ;;  %v1718_v13 = vld [vmem:[%s2168_s2 + $0x18] sm:$0xff]  }
   0x4   :  { %v1714_v10 = vld [vmem:[%s2166_s0 + $0x60] sm:$0xff]   ;;  %v1717_v14 = vld [vmem:[%s2166_s0 + $0x78] sm:$0xff]   ;;  %v1707_v15 = vld [vmem:[%s2166_s0 + $0x28] sm:$0xff]  }
   0x5   :  { %1549 = vmatprep.subr.bf16.mxu0 %v205_v5  ;;  %1691 = vmatprep.subr.bf16.mxu1 %v205_v5  ;;  %v1708_v16 = vld [vmem:[%s2166_s0 + $0x30] sm:$0xff]  }
   0x6   :  { %1550 = vmatpush3.bf16.msra.mxu0 %v205_v5  ;;  %1692 = vmatpush3.bf16.msra.mxu1 %v205_v5 }
   0x7   :  { %1575 = vmatprep.mubr.msk.bf16.mxu1 %vm151_vm2, %v1714_v10  ;;  %1583 = vmatprep.subr.bf16.mxu1 %v1718_v13 }
   0x9   :  { %1552 = vmatmul.mubr.msk.bf16.vlgmr.msra.gmra.mxu0 %vm151_vm2, %v1703_v6  ;;  %1576 = vmatmul.mubr.msk.bf16.vlgmr.msra.gmra.mxu1 %vm151_vm2, %v1715_v11 }
   0xa   :  { %1555 = vmatprep.mubr.msk.bf16.mxu0 %vm151_vm2, %v1704_v7  ;;  %1579 = vmatprep.mubr.msk.bf16.mxu1 %vm151_vm2, %v1716_v12 }
   0xb   :  { %1584 = vmatpush3.bf16.msra.mxu1 %v1718_v13 }
  0x11   :  { %1556 = vmatmul.mubr.msk.bf16.gmra.mxu0 %vm151_vm2, %v1705_v8  ;;  %1580 = vmatmul.mubr.msk.bf16.gmra.mxu1 %vm151_vm2, %v1717_v14 }
  0x12   :  { %1559 = vmatprep.mubr.msk.bf16.mxu0 %vm151_vm2, %v1706_v9 }
  0x19   :  { %1560 = vmatmul.mubr.msk.bf16.gmra.mxu0 %vm151_vm2, %v1707_v15 }
  0x1a   :  { %1563 = vmatprep.mubr.msk.bf16.mxu0 %vm151_vm2, %v1708_v16 }
  0x1b   :  { %13 = vsyncpa [#allocation3], 0  ;;  %v1709_v17 = vld [vmem:[%s2166_s0 + $0x38] sm:$0xff]   ;;  %v1710_v18 = vld [vmem:[%s2166_s0 + $0x40] sm:$0xff]   ;;  %v426_v25 = vlaneseq  ;;  %s1756_s29 = smov 64   ;;  %vm462_vm3 = vcmask 523264  }
  0x1c   :  { %v1711_v19 = vld [vmem:[%s2166_s0 + $0x48] sm:$0xff]   ;;  %v1712_v20 = vld [vmem:[%s2166_s0 + $0x50] sm:$0xff]   ;;  %v1713_v21 = vld [vmem:[%s2166_s0 + $0x58] sm:$0xff]   ;;  %vm1758_vm4 = vmmov 0   ;;  %s1759_s23 = smov 32   ;;  %vm988_vm5 = vcmask 261120  }
  0x1d   :  { %v1719_v22 = vld [vmem:[%s2168_s2 + $0x10] sm:$0xff]   ;;  %v1720_v23 = vld [vmem:[%s2168_s2 + $0x8] sm:$0xff]   ;;  %v1721_v24 = vld [vmem:[%s2168_s2] sm:$0xff]   ;;  %v1894_v28 = vshrl.u32 %v426_v25, 7  ;;  %vm1185_vm6 = vcmask 1041409   ;;  %vm1187_vm7 = vcmask 1042434  }
  0x1e   :  { %1585 = vmatprep.subr.bf16.mxu1 %v1719_v22  ;;  %v1722_v26 = vld [vmem:[%s2169_s3 + $0x38] sm:$0xff]   ;;  %v1723_v27 = vld [vmem:[%s2169_s3 + $0x30] sm:$0xff]   ;;  %v424_v29 = vld [vmem:[%s2173_s7] sm:$0x3]  ;;  %vm1189_vm8 = vcmask 1043459   ;;  %vm1191_vm9 = vcmask 1044484  }
  0x1f   :  { %1586 = vmatpush3.bf16.msra.mxu1 %v1719_v22  ;;  %1623 = vmatprep.subr.bf16.mxu0 %v1722_v26  ;;  %v428_v30 = vsub.s32 0, %v1894_v28  ;;  %v432_v31 = vsub.s32 1, %v1894_v28  ;;  %v1724_v32 = vld [vmem:[%s2169_s3 + $0x28] sm:$0xff]   ;;  %v1725_v35 = vld [vmem:[%s2169_s3 + $0x20] sm:$0xff]   ;;  %v1726_v36 = vld [vmem:[%s2169_s3 + $0x18] sm:$0xff]   ;;  %vm1193_vm10 = vcmask 1045509  }
  0x20   :  { %1587 = vmatprep.subr.bf16.mxu1 %v1720_v23  ;;  %1624 = vmatpush3.bf16.msra.mxu0 %v1722_v26  ;;  %v1727_v37 = vld [vmem:[%s2169_s3 + $0x10] sm:$0xff]   ;;  %v1922_v40 = vld [vmem:[%s2173_s7] ss:$0 sm:$0xff]  ;;  %vm1195_vm11 = vcmask 1046534   ;;  %vm1197_vm12 = vcmask 1047559   ;;  %s1760_s25 = smov 16  }
  0x21   :  { %1564 = vmatmul.mubr.msk.bf16.gmra.mxu0 %vm151_vm2, %v1709_v17  ;;  %1625 = vmatprep.subr.bf16.mxu0 %v1723_v27  ;;  %v429_v33 = vrot.slane %v424_v29, %v428_v30  ;;  %v433_v34 = vrot.slane %v424_v29, %v432_v31  ;;  %vm1280_vm13 = vcmask 130048   ;;  %vm1349_vm14 = vcmask 1043456   ;;  %s1761_s28 = smov 8  }
  0x22   :  { %1567 = vmatprep.mubr.msk.bf16.mxu0 %vm151_vm2, %v1710_v18  ;;  %vm1343_vm15 = vcmask 64512   ;;  %vm1394_vm0 = vcmask 72704  }
  0x23   :  { %1588 = vmatpush3.bf16.msra.mxu1 %v1720_v23  ;;  %458 = vrot.lane.b32.xlu0 %v429_v33, %s1756_s29 }
  0x24   :  { %1589 = vmatprep.subr.bf16.mxu1 %v1721_v24  ;;  %1626 = vmatpush3.bf16.msra.mxu0 %v1723_v27 }
  0x25   :  { %1627 = vmatprep.subr.bf16.mxu0 %v1724_v32 }
  0x27   :  { %1590 = vmatpush3.bf16.msra.mxu1 %v1721_v24  ;;  %460 = vrot.lane.b32.xlu0 %v433_v34, %s1756_s29 }
  0x28   :  { %1628 = vmatpush3.bf16.msra.mxu0 %v1724_v32 }
  0x29   :  { %1568 = vmatmul.mubr.msk.bf16.gmra.mxu0 %vm151_vm2, %v1711_v19  ;;  %1629 = vmatprep.subr.bf16.mxu0 %v1725_v35 }
  0x2a   :  { %1571 = vmatprep.mubr.msk.bf16.mxu0 %vm151_vm2, %v1712_v20 }
  0x2c   :  { %1630 = vmatpush3.bf16.msra.mxu0 %v1725_v35 }
  0x2d   :  { %1631 = vmatprep.subr.bf16.mxu0 %v1726_v36 }
  0x30   :  { %1632 = vmatpush3.bf16.msra.mxu0 %v1726_v36 }
  0x31   :  { %1572 = vmatmul.mubr.msk.bf16.gmra.mxu0 %vm151_vm2, %v1713_v21  ;;  %1633 = vmatprep.subr.bf16.mxu0 %v1727_v37 }
  0x34   :  { %1634 = vmatpush3.bf16.msra.mxu0 %v1727_v37 }
  0xc9   :  { %v1553_v38 = vpop.f32.mrf.mxu0  ;;  %v1934_v6 = vpop.f32.mrf.mxu1 }
  0xca   :  { %v250_v44 = vadd.f32 %v1553_v38, %v1922_v40 }
  0xcb   :  { %v241_v39 = vpop.f32.mrf.mxu0  ;;  %v337_v14 = vpop.f32.mrf.mxu1 }
  0xcc   :  { %v242_v42 = vadd.f32 %v1922_v40, %v241_v39  ;;  %v370_v51 = vmax.f32 %v250_v44, 0.0 }
  0xcd   :  { %v1554_v41 = vpop.f32.mrf.mxu0  ;;  %v1578_v22 = vpop.f32.mrf.mxu1 }
  0xce   :  { %v253_v43 = vadd.f32 %v1554_v41, %v1922_v40  ;;  %v368_v49 = vmax.f32 %v242_v42, 0.0 }
  0xcf   :  { %v244_v45 = vpop.f32.mrf.mxu0  ;;  %v340_v33 = vpop.f32.mrf.mxu1 }
  0xd0   :  { %v245_v46 = vadd.f32 %v1922_v40, %v244_v45  ;;  %v371_v47 = vmax.f32 %v253_v43, 0.0 }
  0xd1   :  { %v1557_v48 = vpop.f32.mrf.mxu0  ;;  %v1581_v42 = vpop.f32.mrf.mxu1 }
  0xd2   :  { %v369_v50 = vmax.f32 %v245_v46, 0.0  ;;  %v401_v54 = vpack.c.bf16 %v371_v47, %v370_v51  ;;  %v266_v58 = vadd.f32 %v1557_v48, %v1922_v40 }
  0xd3   :  { %v257_v52 = vpop.f32.mrf.mxu0 }
  0xd4   :  { %v400_v53 = vpack.c.bf16 %v369_v50, %v368_v49  ;;  %v258_v56 = vadd.f32 %v1922_v40, %v257_v52  ;;  %v374_v1 = vmax.f32 %v266_v58, 0.0  ;;  %v353_v50 = vpop.f32.mrf.mxu1 }
  0xd5   :  { %v1558_v55 = vpop.f32.mrf.mxu0 }
  0xd6   :  { %v269_v57 = vadd.f32 %v1558_v55, %v1922_v40  ;;  %1591 = vmatprep.mubr.msk.bf16.mxu1 %vm462_vm3, %v400_v53  ;;  %v372_v63 = vmax.f32 %v258_v56, 0.0  ;;  %v338_v56 = vadd.f32 %v1922_v40, %v337_v14  ;;  %v346_v14 = vadd.f32 %v1934_v6, %v1922_v40 }
  0xd7   :  { %v260_v59 = vpop.f32.mrf.mxu0  ;;  %1592 = vmatmul.mubr.msk.bf16.vlgmr.msra.gmra.mxu1 %vm462_vm3, %v401_v54 }
  0xd8   :  { %v261_v60 = vadd.f32 %v1922_v40, %v260_v59  ;;  %v375_v61 = vmax.f32 %v269_v57, 0.0  ;;  %v341_v57 = vadd.f32 %v1922_v40, %v340_v33 }
  0xd9   :  { %v1561_v62 = vpop.f32.mrf.mxu0 }
  0xda   :  { %v373_v0 = vmax.f32 %v261_v60, 0.0  ;;  %v403_v4 = vpack.c.bf16 %v375_v61, %v374_v1  ;;  %v282_v9 = vadd.f32 %v1561_v62, %v1922_v40  ;;  %v1582_v60 = vpop.f32.mrf.mxu1  ;;  %v392_v1 = vmax.f32 %v338_v56, 0.0 }
  0xdb   :  { %v273_v2 = vpop.f32.mrf.mxu0 }
  0xdc   :  { %v402_v3 = vpack.c.bf16 %v373_v0, %v372_v63  ;;  %v274_v7 = vadd.f32 %v1922_v40, %v273_v2  ;;  %v378_v17 = vmax.f32 %v282_v9, 0.0 }
  0xdd   :  { %v1562_v5 = vpop.f32.mrf.mxu0 }
  0xde   :  { %v285_v8 = vadd.f32 %v1562_v5, %v1922_v40  ;;  %1595 = vmatprep.mubr.msk.bf16.mxu1 %vm462_vm3, %v402_v3  ;;  %v376_v15 = vmax.f32 %v274_v7, 0.0  ;;  %v393_v3 = vmax.f32 %v341_v57, 0.0  ;;  %v356_v5 = vpop.f32.mrf.mxu1 }
  0xdf   :  { %v276_v10 = vpop.f32.mrf.mxu0  ;;  %1596 = vmatmul.mubr.msk.bf16.gmra.mxu1 %vm462_vm3, %v403_v4 }
  0xe0   :  { %v277_v11 = vadd.f32 %v1922_v40, %v276_v10  ;;  %v379_v12 = vmax.f32 %v285_v8, 0.0 }
  0xe1   :  { %v1565_v13 = vpop.f32.mrf.mxu0 }
  0xe2   :  { %v377_v16 = vmax.f32 %v277_v11, 0.0  ;;  %v405_v20 = vpack.c.bf16 %v379_v12, %v378_v17  ;;  %v298_v25 = vadd.f32 %v1565_v13, %v1922_v40  ;;  %v412_v11 = vpack.c.bf16 %v393_v3, %v392_v1 }
  0xe3   :  { %v289_v18 = vpop.f32.mrf.mxu0  ;;  %v354_v12 = vadd.f32 %v1922_v40, %v353_v50  ;;  %v357_v13 = vadd.f32 %v1922_v40, %v356_v5 }
  0xe4   :  { %v404_v19 = vpack.c.bf16 %v377_v16, %v376_v15  ;;  %v290_v23 = vadd.f32 %v1922_v40, %v289_v18  ;;  %v382_v36 = vmax.f32 %v298_v25, 0.0  ;;  %v349_v16 = vadd.f32 %v1578_v22, %v1922_v40 }
  0xe5   :  { %v1566_v21 = vpop.f32.mrf.mxu0  ;;  %v396_v17 = vmax.f32 %v354_v12, 0.0  ;;  %v397_v18 = vmax.f32 %v357_v13, 0.0  ;;  %v365_v25 = vadd.f32 %v1582_v60, %v1922_v40 }
  0xe6   :  { %v301_v24 = vadd.f32 %v1566_v21, %v1922_v40  ;;  %1599 = vmatprep.mubr.msk.bf16.mxu1 %vm462_vm3, %v404_v19  ;;  %v380_v34 = vmax.f32 %v290_v23, 0.0  ;;  %v394_v19 = vmax.f32 %v346_v14, 0.0 }
  0xe7   :  { %v292_v26 = vpop.f32.mrf.mxu0  ;;  %1600 = vmatmul.mubr.msk.bf16.gmra.mxu1 %vm462_vm3, %v405_v20  ;;  %v395_v20 = vmax.f32 %v349_v16, 0.0  ;;  %v414_v21 = vpack.c.bf16 %v397_v18, %v396_v17  ;;  %v399_v22 = vmax.f32 %v365_v25, 0.0 }
  0xe8   :  { %v293_v27 = vadd.f32 %v1922_v40, %v292_v26  ;;  %v383_v29 = vmax.f32 %v301_v24, 0.0  ;;  %v362_v24 = vadd.f32 %v1581_v42, %v1922_v40 }
  0xe9   :  { %v1569_v32 = vpop.f32.mrf.mxu0  ;;  %v413_v23 = vpack.c.bf16 %v395_v20, %v394_v19 }
  0xea   :  { %v381_v35 = vmax.f32 %v293_v27, 0.0  ;;  %v407_v39 = vpack.c.bf16 %v383_v29, %v382_v36  ;;  %v314_v45 = vadd.f32 %v1569_v32, %v1922_v40  ;;  %v398_v6 = vmax.f32 %v362_v24, 0.0  ;;  %v1728_v27 = vld [vmem:[%s2169_s3 + $0x8] sm:$0xff]   ;;  %v1729_v29 = vld [vmem:[%s2169_s3] sm:$0xff]   ;;  %v459_v32 = vpop.permute.xlu0 %458 }
  0xeb   :  { %v305_v37 = vpop.f32.mrf.mxu0  ;;  %1635 = vmatprep.subr.bf16.mxu0 %v1728_v27 }
  0xec   :  { %v406_v38 = vpack.c.bf16 %v381_v35, %v380_v34  ;;  %v306_v43 = vadd.f32 %v1922_v40, %v305_v37  ;;  %v386_v53 = vmax.f32 %v314_v45, 0.0  ;;  %v415_v26 = vpack.c.bf16 %v399_v22, %v398_v6  ;;  %1636 = vmatpush3.bf16.msra.mxu0 %v1728_v27 }
  0xed   :  { %v1570_v41 = vpop.f32.mrf.mxu0  ;;  %1637 = vmatprep.subr.bf16.mxu0 %v1729_v29 }
  0xee   :  { %v317_v44 = vadd.f32 %v1570_v41, %v1922_v40  ;;  %1603 = vmatprep.mubr.msk.bf16.mxu1 %vm462_vm3, %v406_v38  ;;  %v384_v51 = vmax.f32 %v306_v43, 0.0  ;;  %v461_v33 = vpop.permute.xlu0 %460 }
  0xef   :  { %v308_v46 = vpop.f32.mrf.mxu0  ;;  %1604 = vmatmul.mubr.msk.bf16.gmra.mxu1 %vm462_vm3, %v407_v39  ;;  %v1989_v36 = vsel %vm462_vm3, %v459_v32, %v461_v33 }
  0xf0   :  { %v309_v47 = vadd.f32 %v1922_v40, %v308_v46  ;;  %v387_v48 = vmax.f32 %v317_v44, 0.0  ;;  %1638 = vmatpush3.bf16.msra.mxu0 %v1729_v29 }
  0xf1   :  { %v1573_v49 = vpop.f32.mrf.mxu0 }
  0xf2   :  { %v385_v52 = vmax.f32 %v309_v47, 0.0  ;;  %v409_v58 = vpack.c.bf16 %v387_v48, %v386_v53  ;;  %v330_v63 = vadd.f32 %v1573_v49, %v1922_v40 }
  0xf3   :  { %v321_v54 = vpop.f32.mrf.mxu0 }
  0xf4   :  { %v408_v55 = vpack.c.bf16 %v385_v52, %v384_v51  ;;  %v322_v61 = vadd.f32 %v1922_v40, %v321_v54  ;;  %v390_v9 = vmax.f32 %v330_v63, 0.0 }
  0xf5   :  { %v1574_v59 = vpop.f32.mrf.mxu0 }
  0xf6   :  { %v333_v62 = vadd.f32 %v1574_v59, %v1922_v40  ;;  %1607 = vmatprep.mubr.msk.bf16.mxu1 %vm462_vm3, %v408_v55  ;;  %v388_v7 = vmax.f32 %v322_v61, 0.0 }
  0xf7   :  { %v324_v0 = vpop.f32.mrf.mxu0  ;;  %1608 = vmatmul.mubr.msk.bf16.gmra.mxu1 %vm462_vm3, %v409_v58 }
  0xf8   :  { %v325_v2 = vadd.f32 %v1922_v40, %v324_v0  ;;  %v391_v4 = vmax.f32 %v333_v62, 0.0  ;;  %v1984_v40 = vld [vmem:[%s2173_s7 + $0x1] ss:$0 sm:$0xff] }
  0xf9   :  { %792 = vrot.lane.b32.xlu1 %v1984_v40, %s1756_s29  ;;  %1277 = vrot.lane.b32.xlu0 %v1984_v40, %s1760_s25 }
  0xfa   :  { %v389_v8 = vmax.f32 %v325_v2, 0.0  ;;  %v411_v15 = vpack.c.bf16 %v391_v4, %v390_v9 }
  0xfc   :  { %v410_v10 = vpack.c.bf16 %v389_v8, %v388_v7 }
  0xfd   :  { %1219 = vrot.lane.b32.xlu1 %v1984_v40, %s1759_s23 }
  0xfe   :  { %1611 = vmatprep.mubr.msk.bf16.mxu1 %vm462_vm3, %v410_v10 }
  0xff   :  { %1612 = vmatmul.mubr.msk.bf16.gmra.mxu1 %vm462_vm3, %v411_v15 }
 0x100   :  { %1615 = vmatprep.mubr.msk.bf16.mxu1 %vm462_vm3, %v412_v11 }
 0x107   :  { %1616 = vmatmul.mubr.msk.bf16.gmra.mxu1 %vm462_vm3, %v413_v23 }
 0x108   :  { %1619 = vmatprep.mubr.msk.bf16.mxu1 %vm462_vm3, %v414_v21 }
 0x10f   :  { %1620 = vmatmul.mubr.msk.bf16.gmra.mxu1 %vm462_vm3, %v415_v26 }
 0x197   :  { %v1593_v34 = vpop.f32.mrf.mxu1 }
 0x198   :  { %v556_v41 = vadd.f32 %v1593_v34, %v1989_v36 }
 0x199   :  { %v547_v35 = vpop.f32.mrf.mxu1 }
 0x19a   :  { %v548_v38 = vadd.f32 %v547_v35, %v1989_v36  ;;  %v676_v48 = vmax.f32 %v556_v41, 0.0 }
 0x19b   :  { %v1594_v37 = vpop.f32.mrf.mxu1 }
 0x19c   :  { %v559_v39 = vadd.f32 %v1594_v37, %v1989_v36  ;;  %v674_v46 = vmax.f32 %v548_v38, 0.0 }
 0x19d   :  { %v550_v42 = vpop.f32.mrf.mxu1 }
 0x19e   :  { %v551_v43 = vadd.f32 %v550_v42, %v1989_v36  ;;  %v677_v44 = vmax.f32 %v559_v39, 0.0 }
 0x19f   :  { %v1597_v45 = vpop.f32.mrf.mxu1 }
 0x1a0   :  { %v675_v47 = vmax.f32 %v551_v43, 0.0  ;;  %v707_v51 = vpack.c.bf16 %v677_v44, %v676_v48  ;;  %v572_v55 = vadd.f32 %v1597_v45, %v1989_v36 }
 0x1a1   :  { %v563_v49 = vpop.f32.mrf.mxu1 }
 0x1a2   :  { %v706_v50 = vpack.c.bf16 %v675_v47, %v674_v46  ;;  %v564_v53 = vadd.f32 %v563_v49, %v1989_v36  ;;  %v680_v62 = vmax.f32 %v572_v55, 0.0 }
 0x1a3   :  { %v1598_v52 = vpop.f32.mrf.mxu1 }
 0x1a4   :  { %v575_v54 = vadd.f32 %v1598_v52, %v1989_v36  ;;  %1639 = vmatprep.mubr.bf16.mxu0 %v706_v50  ;;  %v678_v60 = vmax.f32 %v564_v53, 0.0 }
 0x1a5   :  { %v566_v56 = vpop.f32.mrf.mxu1  ;;  %1640 = vmatmul.mubr.bf16.vlgmr.msra.gmra.mxu0 %v707_v51 }
 0x1a6   :  { %v567_v57 = vadd.f32 %v566_v56, %v1989_v36  ;;  %v681_v58 = vmax.f32 %v575_v54, 0.0 }
 0x1a7   :  { %v1601_v59 = vpop.f32.mrf.mxu1 }
 0x1a8   :  { %v679_v61 = vmax.f32 %v567_v57, 0.0  ;;  %v709_v1 = vpack.c.bf16 %v681_v58, %v680_v62  ;;  %v588_v5 = vadd.f32 %v1601_v59, %v1989_v36 }
 0x1a9   :  { %v579_v63 = vpop.f32.mrf.mxu1 }
 0x1aa   :  { %v708_v0 = vpack.c.bf16 %v679_v61, %v678_v60  ;;  %v580_v3 = vadd.f32 %v579_v63, %v1989_v36  ;;  %v684_v13 = vmax.f32 %v588_v5, 0.0 }
 0x1ab   :  { %v1602_v2 = vpop.f32.mrf.mxu1 }
 0x1ac   :  { %v591_v4 = vadd.f32 %v1602_v2, %v1989_v36  ;;  %1643 = vmatprep.mubr.bf16.mxu0 %v708_v0  ;;  %v682_v11 = vmax.f32 %v580_v3, 0.0 }
 0x1ad   :  { %v582_v7 = vpop.f32.mrf.mxu1  ;;  %1644 = vmatmul.mubr.bf16.gmra.mxu0 %v709_v1 }
 0x1ae   :  { %v583_v8 = vadd.f32 %v582_v7, %v1989_v36  ;;  %v685_v9 = vmax.f32 %v591_v4, 0.0 }
 0x1af   :  { %v1605_v10 = vpop.f32.mrf.mxu1 }
 0x1b0   :  { %v683_v12 = vmax.f32 %v583_v8, 0.0  ;;  %v711_v16 = vpack.c.bf16 %v685_v9, %v684_v13  ;;  %v604_v20 = vadd.f32 %v1605_v10, %v1989_v36 }
 0x1b1   :  { %v595_v14 = vpop.f32.mrf.mxu1 }
 0x1b2   :  { %v710_v15 = vpack.c.bf16 %v683_v12, %v682_v11  ;;  %v596_v18 = vadd.f32 %v595_v14, %v1989_v36  ;;  %v688_v26 = vmax.f32 %v604_v20, 0.0 }
 0x1b3   :  { %v1606_v17 = vpop.f32.mrf.mxu1 }
 0x1b4   :  { %v607_v19 = vadd.f32 %v1606_v17, %v1989_v36  ;;  %1647 = vmatprep.mubr.bf16.mxu0 %v710_v15  ;;  %v686_v6 = vmax.f32 %v596_v18, 0.0 }
 0x1b5   :  { %v598_v21 = vpop.f32.mrf.mxu1  ;;  %1648 = vmatmul.mubr.bf16.gmra.mxu0 %v711_v16 }
 0x1b6   :  { %v599_v23 = vadd.f32 %v598_v21, %v1989_v36  ;;  %v689_v24 = vmax.f32 %v607_v19, 0.0 }
 0x1b7   :  { %v1609_v25 = vpop.f32.mrf.mxu1 }
 0x1b8   :  { %v687_v22 = vmax.f32 %v599_v23, 0.0  ;;  %v713_v32 = vpack.c.bf16 %v689_v24, %v688_v26  ;;  %v620_v37 = vadd.f32 %v1609_v25, %v1989_v36  ;;  %v1757_v26 = vmov 0.0  }
 0x1b9   :  { %v611_v27 = vpop.f32.mrf.mxu1  ;;  %1671 = vmatprep.subr.bf16.mxu1 %v1757_v26  ;;  %1675 = vmatprep.mubr.msk.bf16.mxu1 %vm1758_vm4, %v1757_v26 }
 0x1ba   :  { %v712_v29 = vpack.c.bf16 %v687_v22, %v686_v6  ;;  %v612_v34 = vadd.f32 %v611_v27, %v1989_v36  ;;  %v692_v45 = vmax.f32 %v620_v37, 0.0  ;;  %v1730_v22 = vld [vmem:[%s2170_s4 + $0x8] sm:$0xff]   ;;  %v2035_v27 = vpop.permute.xlu1 %792 }
 0x1bb   :  { %v1610_v33 = vpop.f32.mrf.mxu1  ;;  %1672 = vmatpush3.bf16.msra.mxu1 %v1730_v22 }
 0x1bc   :  { %v623_v35 = vadd.f32 %v1610_v33, %v1989_v36  ;;  %1651 = vmatprep.mubr.bf16.mxu0 %v712_v29  ;;  %v690_v43 = vmax.f32 %v612_v34, 0.0  ;;  %1673 = vmatprep.subr.bf16.mxu1 %v1757_v26 }
 0x1bd   :  { %v614_v38 = vpop.f32.mrf.mxu1  ;;  %1652 = vmatmul.mubr.bf16.gmra.mxu0 %v713_v32 }
 0x1be   :  { %v615_v39 = vadd.f32 %v614_v38, %v1989_v36  ;;  %v693_v41 = vmax.f32 %v623_v35, 0.0 }
 0x1bf   :  { %v1613_v42 = vpop.f32.mrf.mxu1 }
 0x1c0   :  { %v691_v44 = vmax.f32 %v615_v39, 0.0  ;;  %v715_v48 = vpack.c.bf16 %v693_v41, %v692_v45  ;;  %v636_v52 = vadd.f32 %v1613_v42, %v1989_v36 }
 0x1c1   :  { %v627_v46 = vpop.f32.mrf.mxu1 }
 0x1c2   :  { %v714_v47 = vpack.c.bf16 %v691_v44, %v690_v43  ;;  %v628_v50 = vadd.f32 %v627_v46, %v1989_v36  ;;  %v696_v59 = vmax.f32 %v636_v52, 0.0 }
 0x1c3   :  { %v1614_v49 = vpop.f32.mrf.mxu1 }
 0x1c4   :  { %v639_v51 = vadd.f32 %v1614_v49, %v1989_v36  ;;  %1655 = vmatprep.mubr.bf16.mxu0 %v714_v47  ;;  %v694_v57 = vmax.f32 %v628_v50, 0.0 }
 0x1c5   :  { %v630_v53 = vpop.f32.mrf.mxu1  ;;  %1656 = vmatmul.mubr.bf16.gmra.mxu0 %v715_v48 }
 0x1c6   :  { %v631_v54 = vadd.f32 %v630_v53, %v1989_v36  ;;  %v697_v55 = vmax.f32 %v639_v51, 0.0 }
 0x1c7   :  { %v1617_v56 = vpop.f32.mrf.mxu1 }
 0x1c8   :  { %v695_v58 = vmax.f32 %v631_v54, 0.0  ;;  %v717_v62 = vpack.c.bf16 %v697_v55, %v696_v59  ;;  %v652_v2 = vadd.f32 %v1617_v56, %v1989_v36 }
 0x1c9   :  { %v643_v60 = vpop.f32.mrf.mxu1 }
 0x1ca   :  { %v716_v61 = vpack.c.bf16 %v695_v58, %v694_v57  ;;  %v644_v0 = vadd.f32 %v643_v60, %v1989_v36  ;;  %v700_v10 = vmax.f32 %v652_v2, 0.0 }
 0x1cb   :  { %v1618_v63 = vpop.f32.mrf.mxu1 }
 0x1cc   :  { %v655_v1 = vadd.f32 %v1618_v63, %v1989_v36  ;;  %1659 = vmatprep.mubr.bf16.mxu0 %v716_v61  ;;  %v698_v8 = vmax.f32 %v644_v0, 0.0 }
 0x1cd   :  { %v646_v3 = vpop.f32.mrf.mxu1  ;;  %1660 = vmatmul.mubr.bf16.gmra.mxu0 %v717_v62 }
 0x1ce   :  { %v647_v4 = vadd.f32 %v646_v3, %v1989_v36  ;;  %v701_v5 = vmax.f32 %v655_v1, 0.0 }
 0x1cf   :  { %v1621_v7 = vpop.f32.mrf.mxu1 }
 0x1d0   :  { %v699_v9 = vmax.f32 %v647_v4, 0.0  ;;  %v719_v13 = vpack.c.bf16 %v701_v5, %v700_v10  ;;  %v668_v17 = vadd.f32 %v1621_v7, %v1989_v36 }
 0x1d1   :  { %v659_v11 = vpop.f32.mrf.mxu1 }
 0x1d2   :  { %v718_v12 = vpack.c.bf16 %v699_v9, %v698_v8  ;;  %v660_v15 = vadd.f32 %v659_v11, %v1989_v36  ;;  %v704_v24 = vmax.f32 %v668_v17, 0.0 }
 0x1d3   :  { %v1622_v14 = vpop.f32.mrf.mxu1 }
 0x1d4   :  { %v671_v16 = vadd.f32 %v1622_v14, %v1989_v36  ;;  %1663 = vmatprep.mubr.bf16.mxu0 %v718_v12  ;;  %v702_v21 = vmax.f32 %v660_v15, 0.0 }
 0x1d5   :  { %v662_v18 = vpop.f32.mrf.mxu1  ;;  %1664 = vmatmul.mubr.bf16.gmra.mxu0 %v719_v13 }
 0x1d6   :  { %v663_v19 = vadd.f32 %v662_v18, %v1989_v36  ;;  %v705_v20 = vmax.f32 %v671_v16, 0.0  ;;  %v1731_v36 = vld [vmem:[%s2170_s4] sm:$0xff]  }
 0x1d7   :  { %1674 = vmatpush3.bf16.msra.mxu1 %v1731_v36 }
 0x1d8   :  { %v703_v23 = vmax.f32 %v663_v19, 0.0  ;;  %v721_v6 = vpack.c.bf16 %v705_v20, %v704_v24  ;;  %1679 = vmatprep.subr.bf16.mxu1 %v1757_v26 }
 0x1da   :  { %v720_v25 = vpack.c.bf16 %v703_v23, %v702_v21 }
 0x1dc   :  { %1667 = vmatprep.mubr.bf16.mxu0 %v720_v25 }
 0x1dd   :  { %1668 = vmatmul.mubr.bf16.gmra.mxu0 %v721_v6 }
 0x265   :  { %v1641_v29 = vpop.f32.mrf.mxu0 }
 0x266   :  { %v838_v32 = vadd.f32 %v1641_v29, %v2035_v27 }
 0x267   :  { %v829_v33 = vpop.f32.mrf.mxu0 }
 0x268   :  { %v830_v34 = vadd.f32 %v829_v33, %v2035_v27  ;;  %v958_v37 = vmax.f32 %v838_v32, 0.0 }
 0x269   :  { %v1642_v35 = vpop.f32.mrf.mxu0 }
 0x26a   :  { %v841_v38 = vadd.f32 %v1642_v35, %v2035_v27  ;;  %v956_v41 = vmax.f32 %v830_v34, 0.0  ;;  %v998_v45 = vsel %vm988_vm5, %v958_v37, -inf }
 0x26b   :  { %v832_v39 = vpop.f32.mrf.mxu0 }
 0x26c   :  { %v959_v42 = vmax.f32 %v841_v38, 0.0  ;;  %v833_v43 = vadd.f32 %v832_v39, %v2035_v27  ;;  %v989_v50 = vsel %vm988_vm5, %v956_v41, -inf }
 0x26d   :  { %v1645_v44 = vpop.f32.mrf.mxu0 }
 0x26e   :  { %v999_v46 = vsel %vm988_vm5, %v959_v42, -inf  ;;  %v957_v47 = vmax.f32 %v833_v43, 0.0  ;;  %v854_v58 = vadd.f32 %v1645_v44, %v2035_v27 }
 0x26f   :  { %v1000_v48 = vmax.f32 %v998_v45, %v999_v46  ;;  %v845_v49 = vpop.f32.mrf.mxu0 }
 0x270   :  { %v990_v51 = vsel %vm988_vm5, %v957_v47, -inf  ;;  %v846_v0 = vadd.f32 %v845_v49, %v2035_v27  ;;  %v962_v2 = vmax.f32 %v854_v58, 0.0 }
 0x271   :  { %v1001_v52 = vrot.slane %v1000_v48, 4  ;;  %v991_v53 = vmax.f32 %v989_v50, %v990_v51  ;;  %v1646_v54 = vpop.f32.mrf.mxu0 }
 0x272   :  { %v857_v55 = vadd.f32 %v1646_v54, %v2035_v27  ;;  %v960_v9 = vmax.f32 %v846_v0, 0.0  ;;  %v1016_v11 = vsel %vm988_vm5, %v962_v2, -inf }
 0x273   :  { %v1002_v56 = vmax.f32 %v1000_v48, %v1001_v52  ;;  %v992_v57 = vrot.slane %v991_v53, 4  ;;  %v848_v59 = vpop.f32.mrf.mxu0 }
 0x274   :  { %v849_v60 = vadd.f32 %v848_v59, %v2035_v27  ;;  %v963_v61 = vmax.f32 %v857_v55, 0.0  ;;  %v1007_v18 = vsel %vm988_vm5, %v960_v9, -inf }
 0x275   :  { %v1649_v62 = vpop.f32.mrf.mxu0  ;;  %v993_v63 = vmax.f32 %v991_v53, %v992_v57  ;;  %v1003_v1 = vrot.slane %v1002_v56, 2 }
 0x276   :  { %v961_v4 = vmax.f32 %v849_v60, 0.0  ;;  %v1017_v5 = vsel %vm988_vm5, %v963_v61, -inf  ;;  %v870_v19 = vadd.f32 %v1649_v62, %v2035_v27 }
 0x277   :  { %v861_v3 = vpop.f32.mrf.mxu0  ;;  %v994_v8 = vrot.slane %v993_v63, 2  ;;  %v1004_v10 = vmax.f32 %v1002_v56, %v1003_v1  ;;  %v1018_v13 = vmax.f32 %v1016_v11, %v1017_v5 }
 0x278   :  { %v1008_v14 = vsel %vm988_vm5, %v961_v4, -inf  ;;  %v862_v6 = vadd.f32 %v861_v3, %v2035_v27  ;;  %v966_v32 = vmax.f32 %v870_v19, 0.0 }
 0x279   :  { %v1650_v7 = vpop.f32.mrf.mxu0  ;;  %v995_v17 = vmax.f32 %v993_v63, %v994_v8  ;;  %v1005_v21 = vrot.slane %v1004_v10, 1  ;;  %v1009_v23 = vmax.f32 %v1007_v18, %v1008_v14  ;;  %v1019_v25 = vrot.slane %v1018_v13, 4 }
 0x27a   :  { %v873_v15 = vadd.f32 %v1650_v7, %v2035_v27  ;;  %v964_v39 = vmax.f32 %v862_v6, 0.0  ;;  %v1034_v44 = vsel %vm988_vm5, %v966_v32, -inf }
 0x27b   :  { %v864_v12 = vpop.f32.mrf.mxu0  ;;  %v996_v29 = vrot.slane %v995_v17, 1  ;;  %v1006_v34 = vmax.f32 %v1004_v10, %v1005_v21  ;;  %v1010_v35 = vrot.slane %v1009_v23, 4  ;;  %v1020_v38 = vmax.f32 %v1018_v13, %v1019_v25 }
 0x27c   :  { %v865_v20 = vadd.f32 %v864_v12, %v2035_v27  ;;  %v967_v22 = vmax.f32 %v873_v15, 0.0  ;;  %v1025_v52 = vsel %vm988_vm5, %v964_v39, -inf }
 0x27d   :  { %v1653_v16 = vpop.f32.mrf.mxu0  ;;  %v997_v43 = vmax.f32 %v995_v17, %v996_v29  ;;  %v1134_v47 = vpack.c.bf16 %v1006_v34, %v1006_v34  ;;  %v1011_v48 = vmax.f32 %v1009_v23, %v1010_v35  ;;  %v1021_v51 = vrot.slane %v1020_v38, 2 }
 0x27e   :  { %v965_v33 = vmax.f32 %v865_v20, 0.0  ;;  %v1035_v41 = vsel %vm988_vm5, %v967_v22, -inf  ;;  %v886_v53 = vadd.f32 %v1653_v16, %v2035_v27 }
 0x27f   :  { %v877_v24 = vpop.f32.mrf.mxu0  ;;  %v1036_v49 = vmax.f32 %v1034_v44, %v1035_v41  ;;  %v1133_v59 = vpack.c.bf16 %v997_v43, %v997_v43  ;;  %v1170_v62 = vunpack.c.l.b16 %v1134_v47  ;;  %v1012_v63 = vrot.slane %v1011_v48, 2 }
 0x280   :  { %v1026_v45 = vsel %vm988_vm5, %v965_v33, -inf  ;;  %v878_v56 = vadd.f32 %v877_v24, %v2035_v27  ;;  %v1022_v3 = vmax.f32 %v1020_v38, %v1021_v51  ;;  %v970_v4 = vmax.f32 %v886_v53, 0.0 }
 0x281   :  { %v1654_v36 = vpop.f32.mrf.mxu0  ;;  %v1027_v55 = vmax.f32 %v1025_v52, %v1026_v45  ;;  %v1037_v0 = vrot.slane %v1036_v49, 4  ;;  %v1169_v13 = vunpack.c.l.b16 %v1133_v59  ;;  %v1013_v17 = vmax.f32 %v1011_v48, %v1012_v63 }
 0x282   :  { %v889_v57 = vadd.f32 %v1654_v36, %v2035_v27  ;;  %v968_v9 = vmax.f32 %v878_v56, 0.0  ;;  %v1023_v23 = vrot.slane %v1022_v3, 1  ;;  %v1052_v24 = vsel %vm988_vm5, %v970_v4, -inf }
 0x283   :  { %v880_v37 = vpop.f32.mrf.mxu0  ;;  %v1028_v8 = vrot.slane %v1027_v55, 4  ;;  %v1038_v18 = vmax.f32 %v1036_v49, %v1037_v0  ;;  %v1014_v39 = vrot.slane %v1013_v17, 1  ;;  %v2081_v45 = vsel %vm1185_vm6, %v1170_v62, %v1169_v13 }
 0x284   :  { %v881_v54 = vadd.f32 %v880_v37, %v2035_v27  ;;  %v971_v10 = vmax.f32 %v889_v57, 0.0  ;;  %v1043_v36 = vsel %vm988_vm5, %v968_v9, -inf  ;;  %v2083_v49 = vmax.f32 %v1022_v3, %v1023_v23 }
 0x285   :  { %v1657_v42 = vpop.f32.mrf.mxu0  ;;  %v1029_v22 = vmax.f32 %v1027_v55, %v1028_v8  ;;  %v1039_v41 = vrot.slane %v1038_v18, 2 }
 0x286   :  { %v902_v46 = vadd.f32 %v1657_v42, %v2035_v27  ;;  %v969_v5 = vmax.f32 %v881_v54, 0.0  ;;  %v1053_v29 = vsel %vm988_vm5, %v971_v10, -inf  ;;  %v1136_v3 = vpack.c.bf16 %v2083_v49, %v2083_v49 }
 0x287   :  { %v893_v50 = vpop.f32.mrf.mxu0  ;;  %v1054_v51 = vmax.f32 %v1052_v24, %v1053_v29  ;;  %v2090_v59 = vmax.f32 %v1038_v18, %v1039_v41 }
 0x288   :  { %v974_v60 = vmax.f32 %v902_v46, 0.0  ;;  %v894_v1 = vadd.f32 %v893_v50, %v2035_v27  ;;  %v1044_v25 = vsel %vm988_vm5, %v969_v5, -inf  ;;  %v1030_v50 = vrot.slane %v1029_v22, 2 }
 0x289   :  { %v1658_v58 = vpop.f32.mrf.mxu0  ;;  %v1045_v42 = vmax.f32 %v1043_v36, %v1044_v25  ;;  %v1055_v9 = vrot.slane %v1054_v51, 4  ;;  %v1041_v18 = vrot.slane %v2090_v59, 1 }
 0x28a   :  { %v905_v61 = vadd.f32 %v1658_v58, %v2035_v27  ;;  %v1070_v14 = vsel %vm988_vm5, %v974_v60, -inf  ;;  %v972_v19 = vmax.f32 %v894_v1, 0.0  ;;  %v2088_v58 = vmax.f32 %v1013_v17, %v1014_v39 }
 0x28b   :  { %v896_v2 = vpop.f32.mrf.mxu0  ;;  %v1046_v60 = vrot.slane %v1045_v42, 4  ;;  %v2095_v4 = vmax.f32 %v1029_v22, %v1030_v50  ;;  %v1056_v36 = vmax.f32 %v1054_v51, %v1055_v9 }
 0x28c   :  { %v975_v7 = vmax.f32 %v905_v61, 0.0  ;;  %v897_v11 = vadd.f32 %v896_v2, %v2035_v27  ;;  %v1061_v43 = vsel %vm988_vm5, %v972_v19, -inf  ;;  %v1135_v13 = vpack.c.bf16 %v2088_v58, %v2088_v58 }
 0x28d   :  { %v1661_v12 = vpop.f32.mrf.mxu0  ;;  %v1032_v23 = vrot.slane %v2095_v4, 1  ;;  %v1172_v58 = vunpack.c.l.b16 %v1136_v3 }
 0x28e   :  { %v1071_v15 = vsel %vm988_vm5, %v975_v7, -inf  ;;  %v918_v16 = vadd.f32 %v1661_v12, %v2035_v27  ;;  %v973_v6 = vmax.f32 %v897_v11, 0.0 }
 0x28f   :  { %v1072_v20 = vmax.f32 %v1070_v14, %v1071_v15  ;;  %v909_v21 = vpop.f32.mrf.mxu0  ;;  %v1047_v14 = vmax.f32 %v1045_v42, %v1046_v60 }
 0x290   :  { %v1062_v34 = vsel %vm988_vm5, %v973_v6, -inf  ;;  %v978_v35 = vmax.f32 %v918_v16, 0.0  ;;  %v910_v37 = vadd.f32 %v909_v21, %v2035_v27 }
 0x291   :  { %v1073_v32 = vrot.slane %v1072_v20, 4  ;;  %v1662_v33 = vpop.f32.mrf.mxu0  ;;  %v1063_v47 = vmax.f32 %v1061_v43, %v1062_v34  ;;  %v1048_v34 = vrot.slane %v1047_v14, 2 }
 0x292   :  { %v921_v38 = vadd.f32 %v1662_v33, %v2035_v27  ;;  %v1088_v55 = vsel %vm988_vm5, %v978_v35, -inf  ;;  %v976_v56 = vmax.f32 %v910_v37, 0.0 }
 0x293   :  { %v912_v44 = vpop.f32.mrf.mxu0  ;;  %v1074_v46 = vmax.f32 %v1072_v20, %v1073_v32  ;;  %v1064_v54 = vrot.slane %v1063_v47, 4 }
 0x294   :  { %v979_v48 = vmax.f32 %v921_v38, 0.0  ;;  %v913_v52 = vadd.f32 %v912_v44, %v2035_v27  ;;  %v1079_v11 = vsel %vm988_vm5, %v976_v56, -inf }
 0x295   :  { %v1665_v53 = vpop.f32.mrf.mxu0  ;;  %v1075_v63 = vrot.slane %v1074_v46, 2  ;;  %v1065_v0 = vmax.f32 %v1063_v47, %v1064_v54 }
 0x296   :  { %v1089_v57 = vsel %vm988_vm5, %v979_v48, -inf  ;;  %v977_v1 = vmax.f32 %v913_v52, 0.0  ;;  %v934_v2 = vadd.f32 %v1665_v53, %v2035_v27  ;;  %v1057_v52 = vrot.slane %v1056_v36, 2 }
 0x297   :  { %v1090_v61 = vmax.f32 %v1088_v55, %v1089_v57  ;;  %v925_v62 = vpop.f32.mrf.mxu0  ;;  %v1066_v10 = vrot.slane %v1065_v0, 2  ;;  %v1076_v19 = vmax.f32 %v1074_v46, %v1075_v63  ;;  %v1049_v63 = vmax.f32 %v1047_v14, %v1048_v34 }
 0x298   :  { %v926_v7 = vadd.f32 %v925_v62, %v2035_v27  ;;  %v1080_v12 = vsel %vm988_vm5, %v977_v1, -inf  ;;  %v982_v20 = vmax.f32 %v934_v2, 0.0 }
 0x299   :  { %v1091_v5 = vrot.slane %v1090_v61, 4  ;;  %v1666_v8 = vpop.f32.mrf.mxu0  ;;  %v1081_v16 = vmax.f32 %v1079_v11, %v1080_v12  ;;  %v1067_v29 = vmax.f32 %v1065_v0, %v1066_v10  ;;  %v1077_v41 = vrot.slane %v1076_v19, 1 }
 0x29a   :  { %v937_v21 = vadd.f32 %v1666_v8, %v2035_v27  ;;  %v980_v25 = vmax.f32 %v926_v7, 0.0  ;;  %v1106_v42 = vsel %vm988_vm5, %v982_v20, -inf }
 0x29b   :  { %v1092_v15 = vmax.f32 %v1090_v61, %v1091_v5  ;;  %v928_v17 = vpop.f32.mrf.mxu0  ;;  %v1082_v24 = vrot.slane %v1081_v16, 4  ;;  %v1068_v53 = vrot.slane %v1067_v29, 1  ;;  %v1078_v5 = vmax.f32 %v1076_v19, %v1077_v41 }
 0x29c   :  { %v929_v6 = vadd.f32 %v928_v17, %v2035_v27  ;;  %v983_v33 = vmax.f32 %v937_v21, 0.0  ;;  %v1097_v47 = vsel %vm988_vm5, %v980_v25, -inf  ;;  %v1033_v19 = vmax.f32 %v2095_v4, %v1032_v23 }
 0x29d   :  { %v1669_v22 = vpop.f32.mrf.mxu0  ;;  %v1093_v32 = vrot.slane %v1092_v15, 2  ;;  %v1083_v35 = vmax.f32 %v1081_v16, %v1082_v24  ;;  %v1069_v10 = vmax.f32 %v1067_v29, %v1068_v53  ;;  %v1042_v23 = vmax.f32 %v2090_v59, %v1041_v18 }
 0x29e   :  { %v981_v37 = vmax.f32 %v929_v6, 0.0  ;;  %v950_v38 = vadd.f32 %v1669_v22, %v2035_v27  ;;  %v1107_v43 = vsel %vm988_vm5, %v983_v33, -inf  ;;  %v1050_v6 = vrot.slane %v1049_v63, 1 }
 0x29f   :  { %v941_v39 = vpop.f32.mrf.mxu0  ;;  %v1084_v46 = vrot.slane %v1083_v35, 2  ;;  %v1108_v48 = vmax.f32 %v1106_v42, %v1107_v43  ;;  %v1094_v54 = vmax.f32 %v1092_v15, %v1093_v32  ;;  %v1058_v32 = vmax.f32 %v1056_v36, %v1057_v52 }
 0x2a0   :  { %v942_v44 = vadd.f32 %v941_v39, %v2035_v27  ;;  %v1098_v50 = vsel %vm988_vm5, %v981_v37, -inf  ;;  %v986_v60 = vmax.f32 %v950_v38, 0.0  ;;  %v1141_v33 = vpack.c.bf16 %v1069_v10, %v1069_v10 }
 0x2a1   :  { %v1670_v51 = vpop.f32.mrf.mxu0  ;;  %v1099_v55 = vmax.f32 %v1097_v47, %v1098_v50  ;;  %v1085_v56 = vmax.f32 %v1083_v35, %v1084_v46  ;;  %v1109_v57 = vrot.slane %v1108_v48, 4  ;;  %v1095_v11 = vrot.slane %v1094_v54, 1 }
 0x2a2   :  { %v953_v61 = vadd.f32 %v1670_v51, %v2035_v27  ;;  %v984_v1 = vmax.f32 %v942_v44, 0.0  ;;  %v1124_v20 = vsel %vm988_vm5, %v986_v60, -inf  ;;  %v1171_v37 = vunpack.c.l.b16 %v1135_v13 }
 0x2a3   :  { %v944_v62 = vpop.f32.mrf.mxu0  ;;  %v1100_v0 = vrot.slane %v1099_v55, 4  ;;  %v1086_v7 = vrot.slane %v1085_v56, 1  ;;  %v1110_v8 = vmax.f32 %v1108_v48, %v1109_v57  ;;  %v1142_v38 = vpack.c.bf16 %v1078_v5, %v1078_v5 }
 0x2a4   :  { %v945_v2 = vadd.f32 %v944_v62, %v2035_v27  ;;  %v987_v9 = vmax.f32 %v953_v61, 0.0  ;;  %v1115_v24 = vsel %vm988_vm5, %v984_v1, -inf  ;;  %v1096_v42 = vmax.f32 %v1094_v54, %v1095_v11 }
 0x2a5   :  { %v1101_v12 = vmax.f32 %v1099_v55, %v1100_v0  ;;  %v1087_v16 = vmax.f32 %v1085_v56, %v1086_v7  ;;  %v1111_v17 = vrot.slane %v1110_v8, 2  ;;  %v1137_v46 = vpack.c.bf16 %v1033_v19, %v1033_v19 }
 0x2a6   :  { %v985_v15 = vmax.f32 %v945_v2, 0.0  ;;  %v1125_v21 = vsel %vm988_vm5, %v987_v9, -inf  ;;  %v1051_v36 = vmax.f32 %v1049_v63, %v1050_v6  ;;  %v1059_v48 = vrot.slane %v1058_v32, 1 }
 0x2a7   :  { %v1102_v14 = vrot.slane %v1101_v12, 2  ;;  %v1126_v25 = vmax.f32 %v1124_v20, %v1125_v21  ;;  %v1112_v22 = vmax.f32 %v1110_v8, %v1111_v17  ;;  %v1143_v39 = vpack.c.bf16 %v1087_v16, %v1087_v16 }
 0x2a8   :  { %v1116_v27 = vsel %vm988_vm5, %v985_v15, -inf  ;;  %v1177_v50 = vunpack.c.l.b16 %v1141_v33  ;;  %v1178_v13 = vunpack.c.l.b16 %v1142_v38  ;;  %v1144_v55 = vpack.c.bf16 %v1096_v42, %v1096_v42  ;;  %v1220_v38 = vpop.permute.xlu1 %1219 }
 0x2a9   :  { %v1117_v29 = vmax.f32 %v1115_v24, %v1116_v27  ;;  %v1103_v34 = vmax.f32 %v1101_v12, %v1102_v14  ;;  %v1127_v35 = vrot.slane %v1126_v25, 4  ;;  %v1113_v43 = vrot.slane %v1112_v22, 1 }
 0x2aa   :  { %v1179_v53 = vunpack.c.l.b16 %v1143_v39  ;;  %v1188_v59 = vsel %vm1187_vm7, %v1171_v37, %v2081_v45  ;;  %v1173_v18 = vunpack.c.l.b16 %v1137_v46  ;;  %v1139_v61 = vpack.c.bf16 %v1051_v36, %v1051_v36  ;;  %v1732_v37 = vld [vmem:[%s2171_s5] sm:$0xff]  }
 0x2ab   :  { %v1118_v41 = vrot.slane %v1117_v29, 4  ;;  %v1104_v44 = vrot.slane %v1103_v34, 1  ;;  %v1128_v4 = vmax.f32 %v1126_v25, %v1127_v35  ;;  %v1114_v56 = vmax.f32 %v1112_v22, %v1113_v43 }
 0x2ac   :  { %v1138_v63 = vpack.c.bf16 %v1042_v23, %v1042_v23  ;;  %v1060_v0 = vmax.f32 %v1058_v32, %v1059_v48  ;;  %v1199_v1 = vsel %vm1185_vm6, %v1178_v13, %v1177_v50  ;;  %v1190_v7 = vsel %vm1189_vm8, %v1172_v58, %v1188_v59  ;;  %v1329_v48 = vld [vmem:[%s2173_s7 + $0x1] sm:$0x3] }
 0x2ad   :  { %v1119_v47 = vmax.f32 %v1117_v29, %v1118_v41  ;;  %v1105_v51 = vmax.f32 %v1103_v34, %v1104_v44  ;;  %v1129_v52 = vrot.slane %v1128_v4, 2  ;;  %v1200_v49 = vsel %vm1187_vm7, %v1179_v53, %v1199_v1 }
 0x2ae   :  { %v1180_v8 = vunpack.c.l.b16 %v1144_v55  ;;  %v1146_v9 = vpack.c.bf16 %v1114_v56, %v1114_v56  ;;  %v1192_v45 = vsel %vm1191_vm9, %v1173_v18, %v1190_v7  ;;  %v1175_v11 = vunpack.c.l.b16 %v1139_v61 }
 0x2af   :  { %v1120_v54 = vrot.slane %v1119_v47, 2  ;;  %v1145_v57 = vpack.c.bf16 %v1105_v51, %v1105_v51  ;;  %v1130_v60 = vmax.f32 %v1128_v4, %v1129_v52  ;;  %v1174_v15 = vunpack.c.l.b16 %v1138_v63 }
 0x2b0   :  { %v1140_v16 = vpack.c.bf16 %v1060_v0, %v1060_v0  ;;  %v1201_v17 = vsel %vm1189_vm8, %v1180_v8, %v1200_v49  ;;  %v1182_v25 = vunpack.c.l.b16 %v1146_v9  ;;  %v1334_v50 = vrot.slane %v1329_v48, %v428_v30 }
 0x2b1   :  { %v1121_v62 = vmax.f32 %v1119_v47, %v1120_v54  ;;  %v1131_v2 = vrot.slane %v1130_v60, 1  ;;  %v1181_v3 = vunpack.c.l.b16 %v1145_v57  ;;  %v1194_v24 = vsel %vm1193_vm10, %v1174_v15, %v1192_v45  ;;  %v1328_v47 = vld [vmem:[%s2172_s6] sm:$0xf]  ;;  %s1762_s6 = smov [#allocation2]  }
 0x2b2   :  { %v1196_v27 = vsel %vm1195_vm11, %v1175_v11, %v1194_v24  ;;  %v1176_v6 = vunpack.c.l.b16 %v1140_v16  ;;  %v1351_v40 = vsel %vm1349_vm14, %v1328_v47, 0  ;;  %v1338_v51 = vrot.slane %v1329_v48, %v432_v31  ;;  %1339 = vrot.lane.b32.xlu1 %v1334_v50, %s1761_s28  ;;  %s1402_s7 = sshll.u32 %s1762_s6, 4  ;;  %s1403_s7 = int_to_ptr.vmem [resolvable:$true] %s1402_s7 }
 0x2b3   :  { %v1122_v5 = vrot.slane %v1121_v62, 1  ;;  %v1132_v10 = vmax.f32 %v1130_v60, %v1131_v2  ;;  %v1202_v21 = vsel %vm1191_vm9, %v1181_v3, %v1201_v17  ;;  %s1733_s29 = scalar_lea.vmem %s1403_s7, 256  ;;  %p1738_p1 = scmp.lt.s32.totalorder %s1403_s7, %s1403_s7 }
 0x2b4   :  { %v1203_v29 = vsel %vm1193_vm10, %v1182_v25, %v1202_v21  ;;  %v1198_v33 = vsel %vm1197_vm12, %v1176_v6, %v1196_v27  ;;  %1341 = vrot.lane.b32.xlu0 %v1338_v51, %s1761_s28  ;;  %p1734_p0 = scmp.ne.s32.totalorder %s1403_s7, %s1733_s29  ;;  %p1739_p2 = scmp.lt.s32.totalorder %s1733_s29, %s1733_s29 }
 0x2b5   :  { %v1123_v12 = vmax.f32 %v1121_v62, %v1122_v5  ;;  %v1148_v20 = vpack.c.bf16 %v1132_v10, %v1132_v10 }
 0x2b6   :  { %p1740_p3 = por %p1739_p2, %p1738_p1 }
 0x2b7   :  { %v1147_v14 = vpack.c.bf16 %v1123_v12, %v1123_v12  ;;  %v1184_v22 = vunpack.c.l.b16 %v1148_v20 }
 0x2b8   :  { %p1741_p4 = pnand %p1740_p3, %p1734_p0 }
 0x2b9   :  { %v1183_v19 = vunpack.c.l.b16 %v1147_v14 }
 0x2bb   :  { %v1204_v32 = vsel %vm1195_vm11, %v1183_v19, %v1203_v29 }
 0x2bc   :  { %v1205_v34 = vsel %vm1197_vm12, %v1184_v22, %v1204_v32 }
 0x2bd   :  { %v1206_v35 = vpack.c.b16 %v1205_v34, %v1198_v33 }
 0x2bf   :  { %1676 = vmatmul.mubr.msk.bf16.vlgmr.msra.gmra.mxu1 %vm988_vm5, %v1206_v35 }
 0x2c0   :  { %1681 = vmatprep.mubr.msk.bf16.mxu1 %vm1758_vm4, %v1757_v26  ;;  %1680 = vmatpush3.bf16.msra.mxu1 %v1732_v37 }
 0x2c1   :  { %1685 = vmatprep.subr.bf16.mxu1 %v1757_v26 }
 0x324   :  { %v1340_v30 = vpop.permute.xlu1 %1339 }
 0x37f   :  { %v1259_v39 = vpop.f32.mrf.mxu1 }
 0x380   :  { %v1260_v42 = vadd.f32 %v1259_v39, %v1220_v38 }
 0x381   :  { %v1677_v41 = vpop.f32.mrf.mxu1 }
 0x382   :  { %v1266_v23 = vmax.f32 %v1260_v42, 0.0 }
 0x383   :  { %v1262_v43 = vpop.f32.mrf.mxu1 }
 0x384   :  { %v1263_v44 = vadd.f32 %v1262_v43, %v1220_v38 }
 0x385   :  { %v1678_v4 = vpop.f32.mrf.mxu1 }
 0x386   :  { %v1267_v46 = vmax.f32 %v1263_v44, 0.0 }
 0x388   :  { %v1268_v36 = vpack.c.bf16 %v1267_v46, %v1266_v23 }
 0x38a   :  { %1682 = vmatmul.mubr.msk.bf16.vlgmr.msra.gmra.mxu1 %vm1280_vm13, %v1268_v36 }
 0x38b   :  { %1687 = vmatprep.mubr.msk.bf16.mxu1 %vm1758_vm4, %v1757_v26  ;;  %1686 = vmatpush3.bf16.msra.mxu1 %v1351_v40  ;;  %v1278_v26 = vpop.permute.xlu0 %1277 }
 0x38f   :  { %v1342_v28 = vpop.permute.xlu0 %1341 }
 0x390   :  { %v1344_v31 = vsel %vm1343_vm15, %v1340_v30, %v1342_v28 }
 0x44a   :  { %v1318_v52 = vpop.f32.mrf.mxu1 }
 0x44b   :  { %v1319_v13 = vadd.f32 %v1318_v52, %v1278_v26 }
 0x44c   :  { %v1683_v58 = vpop.f32.mrf.mxu1 }
 0x44d   :  { %v1325_v56 = vmax.f32 %v1319_v13, 0.0 }
 0x44e   :  { %v1321_v53 = vpop.f32.mrf.mxu1 }
 0x44f   :  { %v1322_v54 = vadd.f32 %v1321_v53, %v1278_v26 }
 0x450   :  { %v1684_v55 = vpop.f32.mrf.mxu1 }
 0x451   :  { %v1326_v57 = vmax.f32 %v1322_v54, 0.0 }
 0x453   :  { %v1327_v60 = vpack.c.bf16 %v1326_v57, %v1325_v56 }
 0x455   :  { %1688 = vmatmul.mubr.msk.bf16.vlgmr.msra.gmra.mxu1 %vm1343_vm15, %v1327_v60 }
 0x515   :  { %v1387_v59 = vpop.f32.mrf.mxu1 }
 0x516   :  { %v1388_v18 = vadd.f32 %v1387_v59, %v1344_v31 }
 0x517   :  { %v1689_v61 = vpop.f32.mrf.mxu1 }
 0x518   :  { %1395 = vst.msk [vmem:[#allocation2] sm:$0xff] %vm1394_vm0, %v1388_v18 }
 0x519   :  { %v1390_v62 = vpop.f32.mrf.mxu1 }
 0x51a   :  { %v1391_v63 = vadd.f32 %v1390_v62, %v1344_v31 }
 0x51b   :  { %v1690_v0 = vpop.f32.mrf.mxu1 }
 0x51c   :  { %1396 = vst.msk [vmem:[#allocation2 + $0x8] sm:$0xff] %vm1394_vm0, %v1391_v63 }
 0x51d   :  { %1744 = shalt.err (!%p1741_p4)
}
 0x51e   :  { %s1763_s30 = smov 128  }
 0x51f   :  { %1408 = dma.vmem_to_hbm [thread:$0]  %s1403_s7, 256, %s2174_s8, [#allocation3], %s1763_s30, %s1763_s30, %s1761_s28  }
 0x520   :  { %1753 = dma.done.wait [#allocation3], 256  }
 0x521   :  { %1754 = vsyncadd [#allocation3], 4294967040 }
 0x522   :  { %1412 = vsyncpa [#allocation3], 1 }

</bundles_post_ra>
